<compile_context>
chip_gen: v7x
topology: tpu7x:2x2x1
jax: 0.10.0
libtpu: 0.0.40
codegen_flags: <defaults>
</compile_context>

<pallas_src>
import math
import functools

import numpy as np
import jax
import jax.numpy as jnp
from jax import lax
from jax.experimental import pallas as pl
from jax.experimental.pallas import tpu as pltpu


def _fastkan_kernel(c_ref, x_ref, sw_ref, bw_ref, b_ref, o_ref, *,
                    n_blk, num_grids, inv_h):
    G = num_grids
    x_blk = x_ref[...]                               # (n_blk, Bt, D)  f32
    centers = c_ref[...]                             # (1, 1, G*D)     f32

    # RBF features for the whole block in one pass; packed-K index k = g*D + d,
    # built by lane-replicating x G times (lane-offset copies, no relayout).
    x_rep = jnp.concatenate([x_blk] * G, axis=-1)    # (n_blk, Bt, G*D)
    z = (x_rep - centers) * inv_h
    rbf = jnp.exp(-(z * z))                          # one big EUP pass, f32
    base = x_blk * jax.nn.sigmoid(x_blk)             # silu(x), f32

    w_dtype = sw_ref.dtype
    outs = []
    for j in range(n_blk):                           # static unroll; leading-axis slices
        acc = lax.dot_general(                       # spline path: (Bt,G*D)x(G*D,O)
            rbf[j].astype(w_dtype), sw_ref[j],
            dimension_numbers=(((1,), (0,)), ((), ())),
            preferred_element_type=jnp.float32)
        acc = acc + lax.dot_general(                 # base path: (Bt,D)x(D,O)
            base[j].astype(w_dtype), bw_ref[j],
            dimension_numbers=(((1,), (0,)), ((), ())),
            preferred_element_type=jnp.float32)
        outs.append(acc + b_ref[j])                  # + (1, O) bias, f32
    # One lane-dense (Bt, n_blk*O) store -> unmasked vst + dense writeback DMA.
    o_ref[...] = jnp.concatenate(outs, axis=-1).astype(o_ref.dtype)


def _pad_axis(a, axis, new_size):
    pad = new_size - a.shape[axis]
    if pad == 0:
        return a
    widths = [(0, 0)] * a.ndim
    widths[axis] = (0, pad)
    return jnp.pad(a, widths)


def _choose_tiles(n, B, D, O, G, param_bytes,
                  weight_budget_bytes, b_tile_cap):
    # Smallest n_blk whose output slab (n_blk*O) is a multiple of 128 lanes.
    lane_unit = 128 // math.gcd(128, O)
    per_n = (G * D + D) * O * param_bytes            # packed weight bytes / sub-layer
    cap = max(1, weight_budget_bytes // (2 * per_n)) # double-buffered weight budget
    cap = min(cap, 16)                               # keep the static unroll short
    if n <= cap:
        n_blk, n_pad = n, n                          # one n tile: block == full last dim
    else:
        n_blk = (cap // lane_unit) * lane_unit
        if n_blk == 0:
            # Need at least lane_unit sub-layers per tile for lane-dense stores;
            # accept a mildly over-budget weight tile rather than masked stores.
            n_blk = lane_unit
        n_pad = ((n + n_blk - 1) // n_blk) * n_blk
    if B <= b_tile_cap:
        b_tile, b_pad = B, B                         # block == full B dim
    else:
        b_tile = b_tile_cap                          # multiple of 8
        b_pad = ((B + b_tile - 1) // b_tile) * b_tile
    return n_blk, n_pad, b_tile, b_pad


def _vmem_limit_bytes(n_blk, b_tile, D, O, G, param_bytes):
    k_sp = G * D
    w = 2 * n_blk * (k_sp + D) * O * param_bytes     # double-buffered weights
    xin = 2 * n_blk * b_tile * D * 4
    out = 2 * b_tile * n_blk * O * 4
    bias = 2 * n_blk * O * 4
    tmp = 4 * n_blk * b_tile * k_sp * 4              # x_rep / rbf temporaries + slack
    need = w + xin + out + bias + tmp + (2 << 20)
    return int(min(64 << 20, max(32 << 20, 2 * need)))


def fastkan_layer(x, spline_weight, base_weight, base_bias,
                  *, grid_min=-2.0, grid_max=2.0, num_grids=8,
                  param_dtype=jnp.bfloat16,
                  weight_budget_bytes=12 << 20, b_tile_cap=256):
    """x: (B, n, D) f32; spline_weight: (n, O, D*G); base_weight: (n, O, D);
    base_bias: (n, O)  ->  (B, n, O) f32."""
    B, n, D = x.shape
    O = spline_weight.shape[1]
    G = num_grids
    h = (grid_max - grid_min) / (G - 1) if G > 1 else 1.0
    # TODO(synk): num_grids == 1 gives h == 0 (inf/nan) in the torch module;
    # we use h = 1 instead of reproducing the division by zero.
    inv_h = 1.0 / h

    param_bytes = jnp.dtype(param_dtype).itemsize
    n_blk, n_pad, b_tile, b_pad = _choose_tiles(
        n, B, D, O, G, param_bytes, weight_budget_bytes, b_tile_cap)

    # ---- one-time host-side packing / layout (cheap vs. weight DMA) --------
    # spline_weight's flat K index is d*G + g (torch view order); reorder to
    # k = g*D + d and move O to the lane axis.
    sw = spline_weight.reshape(n, O, D, G)
    sw = jnp.transpose(sw, (0, 3, 2, 1)).reshape(n, G * D, O)       # (n, G*D, O)
    bw = jnp.transpose(base_weight, (0, 2, 1))                      # (n, D, O)
    bias = base_bias.reshape(n, 1, O).astype(jnp.float32)           # (n, 1, O)
    x_t = jnp.transpose(x, (1, 0, 2)).astype(jnp.float32)           # (n, B, D)

    sw = _pad_axis(sw, 0, n_pad).astype(param_dtype)
    bw = _pad_axis(bw, 0, n_pad).astype(param_dtype)
    bias = _pad_axis(bias, 0, n_pad)
    x_t = _pad_axis(_pad_axis(x_t, 0, n_pad), 1, b_pad)

    # RBF centers in the packed K layout (k = g*D + d -> grid[g]); static const.
    grid_vals = np.linspace(grid_min, grid_max, G, dtype=np.float32)
    centers = jnp.asarray(np.repeat(grid_vals, D)[None, None, :])   # (1, 1, G*D)

    n_tiles = n_pad // n_blk
    b_tiles = b_pad // b_tile

    kernel = functools.partial(_fastkan_kernel, n_blk=n_blk, num_grids=G,
                               inv_h=float(inv_h))

    out = pl.pallas_call(
        kernel,
        out_shape=jax.ShapeDtypeStruct((b_pad, n_pad * O), jnp.float32),
        grid_spec=pltpu.PrefetchScalarGridSpec(
            num_scalar_prefetch=0,
            # B innermost: weight blocks (index_map independent of bi) stay
            # resident and are not re-DMA'd across the B steps of one n-tile.
            grid=(n_tiles, b_tiles),
            in_specs=[
                pl.BlockSpec((1, 1, G * D), lambda ni, bi: (0, 0, 0)),        # centers
                pl.BlockSpec((n_blk, b_tile, D), lambda ni, bi: (ni, bi, 0)), # x (n,B,D)
                pl.BlockSpec((n_blk, G * D, O), lambda ni, bi: (ni, 0, 0)),   # spline W
                pl.BlockSpec((n_blk, D, O), lambda ni, bi: (ni, 0, 0)),       # base W
                pl.BlockSpec((n_blk, 1, O), lambda ni, bi: (ni, 0, 0)),       # bias
            ],
            out_specs=pl.BlockSpec((b_tile, n_blk * O), lambda ni, bi: (bi, ni)),
        ),
        compiler_params=pltpu.CompilerParams(
            dimension_semantics=("parallel", "parallel"),
            vmem_limit_bytes=_vmem_limit_bytes(n_blk, b_tile, D, O, G, param_bytes)),
    )(centers, x_t, sw, bw, bias)

    # Pure layout plumbing: (b_pad, n_pad*O) -> (B, n, O).
    return out.reshape(b_pad, n_pad, O)[:B, :n, :]


def fastkan_reference(x, spline_weight, base_weight, base_bias,
                      *, grid_min=-2.0, grid_max=2.0, num_grids=8):
    """Pure-JAX reference mirroring the PyTorch forward."""
    h = (grid_max - grid_min) / (num_grids - 1) if num_grids > 1 else 1.0
    grid_vals = jnp.linspace(grid_min, grid_max, num_grids)
    dist = (x[..., None] - grid_vals) / h
    rbf = jnp.exp(-dist ** 2)                                   # (B, n, D, G)
    rbf_flat = rbf.reshape(*rbf.shape[:-2], -1)                 # (B, n, D*G)
    spline = jnp.einsum('bni,noi->bno', rbf_flat, spline_weight)
    base = jnp.einsum('bni,noi->bno', jax.nn.silu(x), base_weight)
    return spline + base + base_bias[None]


if __name__ == "__main__":
    # Module hyperparameters (use_base_update=True, use_layernorm=False default).
    n, input_dim, output_dim, num_grids = 4, 16, 32, 8
    grid_min, grid_max = -2.0, 2.0
    spline_weight_init_scale = 0.1
    B = 8

    key = jax.random.PRNGKey(0)
    k_x, k_sw, k_bw, k_bb = jax.random.split(key, 4)

    x = jax.random.normal(k_x, (B, n, input_dim), dtype=jnp.float32)

    # Deterministic parameter init matching the PyTorch __init__ distributions.
    spline_weight = (spline_weight_init_scale *
                     jax.random.normal(k_sw, (n, output_dim, input_dim * num_grids),
                                       dtype=jnp.float32))
    bound = 1.0 / math.sqrt(input_dim)        # kaiming_uniform_(a=sqrt(5)), fan_in = D
    base_weight = jax.random.uniform(k_bw, (n, output_dim, input_dim),
                                     minval=-bound, maxval=bound, dtype=jnp.float32)
    base_bias = jax.random.uniform(k_bb, (n, output_dim),
                                   minval=-bound, maxval=bound, dtype=jnp.float32)

    ref = fastkan_reference(x, spline_weight, base_weight, base_bias,
                            grid_min=grid_min, grid_max=grid_max,
                            num_grids=num_grids)

    # f32-weight path: bitwise-faithful to the module, tight tolerance.
    out_f32 = jax.block_until_ready(
        fastkan_layer(x, spline_weight, base_weight, base_bias,
                      grid_min=grid_min, grid_max=grid_max, num_grids=num_grids,
                      param_dtype=jnp.float32))
    assert out_f32.shape == (B, n, output_dim)
    assert jnp.max(jnp.abs(out_f32 - ref)) < 1e-4

    # Default bf16-weight path (halved weight DMA); relaxed tolerance.
    out_bf16 = jax.block_until_ready(
        fastkan_layer(x, spline_weight, base_weight, base_bias,
                      grid_min=grid_min, grid_max=grid_max, num_grids=num_grids))
    assert out_bf16.shape == (B, n, output_dim)
    assert jnp.max(jnp.abs(out_bf16 - ref)) < 5e-2

    print("KERNEL_OK")
</pallas_src>

<mosaic_0001>
module attributes {stable_mosaic.version = 11 : i64} {
  func.func @_fastkan_kernel(%arg0: i32, %arg1: i32, %arg2: memref<1x1x128xf32, #tpu.memory_space<vmem>>, %arg3: memref<4x8x16xf32, #tpu.memory_space<vmem>>, %arg4: memref<4x128x32xf32, #tpu.memory_space<vmem>>, %arg5: memref<4x16x32xf32, #tpu.memory_space<vmem>>, %arg6: memref<4x1x32xf32, #tpu.memory_space<vmem>>, %arg7: memref<8x128xf32, #tpu.memory_space<vmem>>) attributes {dimension_semantics = [#tpu.dimension_semantics<parallel>, #tpu.dimension_semantics<parallel>], iteration_bounds = array<i64: 1, 1>, scalar_prefetch = 0 : i64, scratch_operands = 0 : i64, tpu.core_type = #tpu.core_type<tc>, window_params = [{pipeline_mode = #tpu.pipeline_mode<synchronous>, transform_indices = @transform_0, window_bounds = array<i64: 1, 1, 128>}, {transform_indices = @transform_1, window_bounds = array<i64: 4, 8, 16>}, {transform_indices = @transform_2, window_bounds = array<i64: 4, 128, 32>}, {transform_indices = @transform_3, window_bounds = array<i64: 4, 16, 32>}, {transform_indices = @transform_4, window_bounds = array<i64: 4, 1, 32>}, {transform_indices = @transform_5, window_bounds = array<i64: 8, 128>}]} {
    %c0 = arith.constant 0 : index
    %c0_0 = arith.constant 0 : index
    %c0_1 = arith.constant 0 : index
    %0 = vector.load %arg3[%c0, %c0_0, %c0_1] : memref<4x8x16xf32, #tpu.memory_space<vmem>>, vector<4x8x16xf32>
    %c0_2 = arith.constant 0 : index
    %c0_3 = arith.constant 0 : index
    %c0_4 = arith.constant 0 : index
    %1 = vector.load %arg2[%c0_2, %c0_3, %c0_4] : memref<1x1x128xf32, #tpu.memory_space<vmem>>, vector<1x1x128xf32>
    %2 = tpu.concatenate %0, %0, %0, %0, %0, %0, %0, %0 in 2 : vector<4x8x16xf32>, vector<4x8x16xf32>, vector<4x8x16xf32>, vector<4x8x16xf32>, vector<4x8x16xf32>, vector<4x8x16xf32>, vector<4x8x16xf32>, vector<4x8x16xf32> -> vector<4x8x128xf32>
    %3 = vector.broadcast %1 : vector<1x1x128xf32> to vector<4x8x128xf32>
    %4 = arith.subf %2, %3 : vector<4x8x128xf32>
    %cst = arith.constant 1.750000e+00 : f32
    %5 = vector.broadcast %cst : f32 to vector<4x8x128xf32>
    %6 = arith.mulf %4, %5 : vector<4x8x128xf32>
    %7 = arith.mulf %6, %6 : vector<4x8x128xf32>
    %cst_5 = arith.constant 0.000000e+00 : f32
    %8 = vector.broadcast %cst_5 : f32 to vector<4x8x128xf32>
    %9 = arith.subf %8, %7 : vector<4x8x128xf32>
    %10 = math.exp %9 : vector<4x8x128xf32>
    %11 = arith.negf %0 : vector<4x8x16xf32>
    %12 = math.exp %11 : vector<4x8x16xf32>
    %cst_6 = arith.constant 1.000000e+00 : f32
    %13 = vector.broadcast %cst_6 : f32 to vector<4x8x16xf32>
    %14 = arith.addf %13, %12 : vector<4x8x16xf32>
    %15 = arith.divf %13, %14 : vector<4x8x16xf32>
    %16 = arith.mulf %0, %15 : vector<4x8x16xf32>
    %17 = vector.extract_strided_slice %10 {offsets = [0, 0, 0], sizes = [1, 8, 128], strides = [1, 1, 1]} : vector<4x8x128xf32> to vector<1x8x128xf32>
    %18 = vector.shape_cast %17 : vector<1x8x128xf32> to vector<8x128xf32>
    %c0_7 = arith.constant 0 : index
    %c0_8 = arith.constant 0 : index
    %c0_9 = arith.constant 0 : index
    %19 = vector.load %arg4[%c0_7, %c0_8, %c0_9] : memref<4x128x32xf32, #tpu.memory_space<vmem>>, vector<1x128x32xf32>
    %20 = vector.shape_cast %19 : vector<1x128x32xf32> to vector<128x32xf32>
    %cst_10 = arith.constant dense<0.000000e+00> : vector<8x32xf32>
    %21 = tpu.matmul %18, %20, %cst_10 {dimension_numbers = #tpu.dot_dimension_numbers<[1], [0], [0], [1], [0, 0, 1, 1], [], []>} : vector<8x128xf32>, vector<128x32xf32>, vector<8x32xf32> -> vector<8x32xf32>
    %22 = vector.extract_strided_slice %16 {offsets = [0, 0, 0], sizes = [1, 8, 16], strides = [1, 1, 1]} : vector<4x8x16xf32> to vector<1x8x16xf32>
    %23 = vector.shape_cast %22 : vector<1x8x16xf32> to vector<8x16xf32>
    %c0_11 = arith.constant 0 : index
    %c0_12 = arith.constant 0 : index
    %c0_13 = arith.constant 0 : index
    %24 = vector.load %arg5[%c0_11, %c0_12, %c0_13] : memref<4x16x32xf32, #tpu.memory_space<vmem>>, vector<1x16x32xf32>
    %25 = vector.shape_cast %24 : vector<1x16x32xf32> to vector<16x32xf32>
    %cst_14 = arith.constant dense<0.000000e+00> : vector<8x32xf32>
    %26 = tpu.matmul %23, %25, %cst_14 {dimension_numbers = #tpu.dot_dimension_numbers<[1], [0], [0], [1], [0, 0, 1, 1], [], []>} : vector<8x16xf32>, vector<16x32xf32>, vector<8x32xf32> -> vector<8x32xf32>
    %27 = arith.addf %21, %26 : vector<8x32xf32>
    %c0_15 = arith.constant 0 : index
    %c0_16 = arith.constant 0 : index
    %c0_17 = arith.constant 0 : index
    %28 = vector.load %arg6[%c0_15, %c0_16, %c0_17] : memref<4x1x32xf32, #tpu.memory_space<vmem>>, vector<1x1x32xf32>
    %29 = vector.shape_cast %28 : vector<1x1x32xf32> to vector<1x32xf32>
    %30 = vector.broadcast %29 : vector<1x32xf32> to vector<8x32xf32>
    %31 = arith.addf %27, %30 : vector<8x32xf32>
    %32 = vector.extract_strided_slice %10 {offsets = [1, 0, 0], sizes = [1, 8, 128], strides = [1, 1, 1]} : vector<4x8x128xf32> to vector<1x8x128xf32>
    %33 = vector.shape_cast %32 : vector<1x8x128xf32> to vector<8x128xf32>
    %c1 = arith.constant 1 : index
    %c0_18 = arith.constant 0 : index
    %c0_19 = arith.constant 0 : index
    %34 = vector.load %arg4[%c1, %c0_18, %c0_19] : memref<4x128x32xf32, #tpu.memory_space<vmem>>, vector<1x128x32xf32>
    %35 = vector.shape_cast %34 : vector<1x128x32xf32> to vector<128x32xf32>
    %cst_20 = arith.constant dense<0.000000e+00> : vector<8x32xf32>
    %36 = tpu.matmul %33, %35, %cst_20 {dimension_numbers = #tpu.dot_dimension_numbers<[1], [0], [0], [1], [0, 0, 1, 1], [], []>} : vector<8x128xf32>, vector<128x32xf32>, vector<8x32xf32> -> vector<8x32xf32>
    %37 = vector.extract_strided_slice %16 {offsets = [1, 0, 0], sizes = [1, 8, 16], strides = [1, 1, 1]} : vector<4x8x16xf32> to vector<1x8x16xf32>
    %38 = vector.shape_cast %37 : vector<1x8x16xf32> to vector<8x16xf32>
    %c1_21 = arith.constant 1 : index
    %c0_22 = arith.constant 0 : index
    %c0_23 = arith.constant 0 : index
    %39 = vector.load %arg5[%c1_21, %c0_22, %c0_23] : memref<4x16x32xf32, #tpu.memory_space<vmem>>, vector<1x16x32xf32>
    %40 = vector.shape_cast %39 : vector<1x16x32xf32> to vector<16x32xf32>
    %cst_24 = arith.constant dense<0.000000e+00> : vector<8x32xf32>
    %41 = tpu.matmul %38, %40, %cst_24 {dimension_numbers = #tpu.dot_dimension_numbers<[1], [0], [0], [1], [0, 0, 1, 1], [], []>} : vector<8x16xf32>, vector<16x32xf32>, vector<8x32xf32> -> vector<8x32xf32>
    %42 = arith.addf %36, %41 : vector<8x32xf32>
    %c1_25 = arith.constant 1 : index
    %c0_26 = arith.constant 0 : index
    %c0_27 = arith.constant 0 : index
    %43 = vector.load %arg6[%c1_25, %c0_26, %c0_27] : memref<4x1x32xf32, #tpu.memory_space<vmem>>, vector<1x1x32xf32>
    %44 = vector.shape_cast %43 : vector<1x1x32xf32> to vector<1x32xf32>
    %45 = vector.broadcast %44 : vector<1x32xf32> to vector<8x32xf32>
    %46 = arith.addf %42, %45 : vector<8x32xf32>
    %47 = vector.extract_strided_slice %10 {offsets = [2, 0, 0], sizes = [1, 8, 128], strides = [1, 1, 1]} : vector<4x8x128xf32> to vector<1x8x128xf32>
    %48 = vector.shape_cast %47 : vector<1x8x128xf32> to vector<8x128xf32>
    %c2 = arith.constant 2 : index
    %c0_28 = arith.constant 0 : index
    %c0_29 = arith.constant 0 : index
    %49 = vector.load %arg4[%c2, %c0_28, %c0_29] : memref<4x128x32xf32, #tpu.memory_space<vmem>>, vector<1x128x32xf32>
    %50 = vector.shape_cast %49 : vector<1x128x32xf32> to vector<128x32xf32>
    %cst_30 = arith.constant dense<0.000000e+00> : vector<8x32xf32>
    %51 = tpu.matmul %48, %50, %cst_30 {dimension_numbers = #tpu.dot_dimension_numbers<[1], [0], [0], [1], [0, 0, 1, 1], [], []>} : vector<8x128xf32>, vector<128x32xf32>, vector<8x32xf32> -> vector<8x32xf32>
    %52 = vector.extract_strided_slice %16 {offsets = [2, 0, 0], sizes = [1, 8, 16], strides = [1, 1, 1]} : vector<4x8x16xf32> to vector<1x8x16xf32>
    %53 = vector.shape_cast %52 : vector<1x8x16xf32> to vector<8x16xf32>
    %c2_31 = arith.constant 2 : index
    %c0_32 = arith.constant 0 : index
    %c0_33 = arith.constant 0 : index
    %54 = vector.load %arg5[%c2_31, %c0_32, %c0_33] : memref<4x16x32xf32, #tpu.memory_space<vmem>>, vector<1x16x32xf32>
    %55 = vector.shape_cast %54 : vector<1x16x32xf32> to vector<16x32xf32>
    %cst_34 = arith.constant dense<0.000000e+00> : vector<8x32xf32>
    %56 = tpu.matmul %53, %55, %cst_34 {dimension_numbers = #tpu.dot_dimension_numbers<[1], [0], [0], [1], [0, 0, 1, 1], [], []>} : vector<8x16xf32>, vector<16x32xf32>, vector<8x32xf32> -> vector<8x32xf32>
    %57 = arith.addf %51, %56 : vector<8x32xf32>
    %c2_35 = arith.constant 2 : index
    %c0_36 = arith.constant 0 : index
    %c0_37 = arith.constant 0 : index
    %58 = vector.load %arg6[%c2_35, %c0_36, %c0_37] : memref<4x1x32xf32, #tpu.memory_space<vmem>>, vector<1x1x32xf32>
    %59 = vector.shape_cast %58 : vector<1x1x32xf32> to vector<1x32xf32>
    %60 = vector.broadcast %59 : vector<1x32xf32> to vector<8x32xf32>
    %61 = arith.addf %57, %60 : vector<8x32xf32>
    %62 = vector.extract_strided_slice %10 {offsets = [3, 0, 0], sizes = [1, 8, 128], strides = [1, 1, 1]} : vector<4x8x128xf32> to vector<1x8x128xf32>
    %63 = vector.shape_cast %62 : vector<1x8x128xf32> to vector<8x128xf32>
    %c3 = arith.constant 3 : index
    %c0_38 = arith.constant 0 : index
    %c0_39 = arith.constant 0 : index
    %64 = vector.load %arg4[%c3, %c0_38, %c0_39] : memref<4x128x32xf32, #tpu.memory_space<vmem>>, vector<1x128x32xf32>
    %65 = vector.shape_cast %64 : vector<1x128x32xf32> to vector<128x32xf32>
    %cst_40 = arith.constant dense<0.000000e+00> : vector<8x32xf32>
    %66 = tpu.matmul %63, %65, %cst_40 {dimension_numbers = #tpu.dot_dimension_numbers<[1], [0], [0], [1], [0, 0, 1, 1], [], []>} : vector<8x128xf32>, vector<128x32xf32>, vector<8x32xf32> -> vector<8x32xf32>
    %67 = vector.extract_strided_slice %16 {offsets = [3, 0, 0], sizes = [1, 8, 16], strides = [1, 1, 1]} : vector<4x8x16xf32> to vector<1x8x16xf32>
    %68 = vector.shape_cast %67 : vector<1x8x16xf32> to vector<8x16xf32>
    %c3_41 = arith.constant 3 : index
    %c0_42 = arith.constant 0 : index
    %c0_43 = arith.constant 0 : index
    %69 = vector.load %arg5[%c3_41, %c0_42, %c0_43] : memref<4x16x32xf32, #tpu.memory_space<vmem>>, vector<1x16x32xf32>
    %70 = vector.shape_cast %69 : vector<1x16x32xf32> to vector<16x32xf32>
    %cst_44 = arith.constant dense<0.000000e+00> : vector<8x32xf32>
    %71 = tpu.matmul %68, %70, %cst_44 {dimension_numbers = #tpu.dot_dimension_numbers<[1], [0], [0], [1], [0, 0, 1, 1], [], []>} : vector<8x16xf32>, vector<16x32xf32>, vector<8x32xf32> -> vector<8x32xf32>
    %72 = arith.addf %66, %71 : vector<8x32xf32>
    %c3_45 = arith.constant 3 : index
    %c0_46 = arith.constant 0 : index
    %c0_47 = arith.constant 0 : index
    %73 = vector.load %arg6[%c3_45, %c0_46, %c0_47] : memref<4x1x32xf32, #tpu.memory_space<vmem>>, vector<1x1x32xf32>
    %74 = vector.shape_cast %73 : vector<1x1x32xf32> to vector<1x32xf32>
    %75 = vector.broadcast %74 : vector<1x32xf32> to vector<8x32xf32>
    %76 = arith.addf %72, %75 : vector<8x32xf32>
    %77 = tpu.concatenate %31, %46, %61, %76 in 1 : vector<8x32xf32>, vector<8x32xf32>, vector<8x32xf32>, vector<8x32xf32> -> vector<8x128xf32>
    %c0_48 = arith.constant 0 : index
    %c0_49 = arith.constant 0 : index
    %78 = vector.load %arg7[%c0_48, %c0_49] : memref<8x128xf32, #tpu.memory_space<vmem>>, vector<8x128xf32>
    tpu.vector_store %arg7[%c0_48, %c0_49], %77 {strides = array<i32>} : memref<8x128xf32, #tpu.memory_space<vmem>>, vector<8x128xf32>,
    return
  }
  func.func @transform_0(%arg0: i32, %arg1: i32) -> (i32, i32, i32) {
    %c0_i32 = arith.constant 0 : i32
    %c0_i32_0 = arith.constant 0 : i32
    %c0_i32_1 = arith.constant 0 : i32
    %c0_i32_2 = arith.constant 0 : i32
    return %c0_i32, %c0_i32_0, %c0_i32_1 : i32, i32, i32
  }
  func.func @transform_1(%arg0: i32, %arg1: i32) -> (i32, i32, i32) {
    %c0_i32 = arith.constant 0 : i32
    %c0_i32_0 = arith.constant 0 : i32
    return %arg0, %arg1, %c0_i32 : i32, i32, i32
  }
  func.func @transform_2(%arg0: i32, %arg1: i32) -> (i32, i32, i32) {
    %c0_i32 = arith.constant 0 : i32
    %c0_i32_0 = arith.constant 0 : i32
    %c0_i32_1 = arith.constant 0 : i32
    return %arg0, %c0_i32, %c0_i32_0 : i32, i32, i32
  }
  func.func @transform_3(%arg0: i32, %arg1: i32) -> (i32, i32, i32) {
    %c0_i32 = arith.constant 0 : i32
    %c0_i32_0 = arith.constant 0 : i32
    %c0_i32_1 = arith.constant 0 : i32
    return %arg0, %c0_i32, %c0_i32_0 : i32, i32, i32
  }
  func.func @transform_4(%arg0: i32, %arg1: i32) -> (i32, i32, i32) {
    %c0_i32 = arith.constant 0 : i32
    %c0_i32_0 = arith.constant 0 : i32
    %c0_i32_1 = arith.constant 0 : i32
    return %arg0, %c0_i32, %c0_i32_0 : i32, i32, i32
  }
  func.func @transform_5(%arg0: i32, %arg1: i32) -> (i32, i32) {
    %c0_i32 = arith.constant 0 : i32
    return %arg1, %arg0 : i32, i32
  }
}

</mosaic_0001>

<bundles_post_ra>
// kernel: tpu_custom_call.1
= control target key start
LH: loop header
LB: loop body
LE: loop exit
PB: predicated region body
PF: predicated region fallthrough
CT: control target
= control target key end

     0   :  { %s1407_s20 = smov 32   ;;  %s1408_s21 = smov 16   ;;  %v1409_v2 = vmov 0.0|0.0   ;;  %vm1410_vm0 = vmmov 0   ;;  %v1411_v10 = vmov 0.0   ;;  %s1875_s0 = inlined_call_operand.vmem [shape: f32[1,1,128], index: 0, kind: input, shape index: {}]   ;;  %s1876_s1 = inlined_call_operand.vmem [shape: f32[4,8,16], index: 1, kind: input, shape index: {}]   ;;  %s1877_s2 = inlined_call_operand.vmem [shape: f32[4,128,32], index: 2, kind: input, shape index: {}]   ;;  %s1878_s3 = inlined_call_operand.vmem [shape: f32[4,16,32], index: 3, kind: input, shape index: {}]   ;;  %s1879_s4 = inlined_call_operand.vmem [shape: f32[4,1,32], index: 4, kind: input, shape index: {}]   ;;  %s1880_s5 = inlined_call_operand.hbm [shape: f32[8,128], index: 5, kind: output, shape index: {}]  }
   0x1   :  { %v1451_v0 = vld [vmem:[%s1876_s1] sm:$0xff]  ;;  %v1460_v1 = vld [vmem:[%s1876_s1 + $0x8] sm:$0xff]  ;;  %1240 = vmatprep.subr.bf16.mxu1 %v1409_v2  ;;  %1267 = vmatprep.subr.bf16.mxu0 %v1409_v2  ;;  %v945_v5 = vld [vmem:[%s1878_s3 + $0x10] sm:$0xff] }
   0x2   :  { %42 = vrot.lane.b32.xlu1 %v1451_v0, %s1407_s20  ;;  %30 = vrot.lane.b32.xlu0 %v1451_v0, %s1408_s21  ;;  %v223_v3 = vld [vmem:[%s1878_s3] sm:$0xff]  ;;  %v224_v4 = vld [vmem:[%s1878_s3 + $0x8] sm:$0xff]  ;;  %v923_v8 = vmul.f32 -1.442695, %v1451_v0  ;;  %v924_v11 = vmul.f32 -1.442695, %v1460_v1 }
   0x3   :  { %v1241_v6 = vpack.c.bf16 %v224_v4, %v223_v3  ;;  %v946_v7 = vld [vmem:[%s1878_s3 + $0x18] sm:$0xff]  ;;  %1076 = vmatprep.mubr.msk.f32.mxu1 %vm1410_vm0, %v1411_v10  ;;  %1118 = vmatprep.mubr.msk.f32.mxu0 %vm1410_vm0, %v1411_v10 }
   0x4   :  { %v1268_v9 = vpack.c.bf16 %v946_v7, %v945_v5  ;;  %1359 = vpow2.f32 %v923_v8 }
   0x5   :  { %1242 = vmatpush3.bf16.msra.mxu1 %v1241_v6  ;;  %1361 = vpow2.f32 %v924_v11 }
   0x6   :  { %44 = vrot.lane.b32.xlu1 %v1460_v1, %s1407_s20  ;;  %32 = vrot.lane.b32.xlu0 %v1460_v1, %s1408_s21 }
   0x7   :  { %1269 = vmatpush3.bf16.msra.mxu0 %v1268_v9  ;;  %1243 = vmatprep.subr.bf16.mxu1 %v1409_v2 }
   0x8   :  { %1270 = vmatprep.subr.bf16.mxu0 %v1409_v2 }
   0x9   :  { %10 = vsyncpa [#allocation3], 0  ;;  %s1412_s7 = smov 48   ;;  %s1413_s8 = smov 64   ;;  %v207_v16 = vld [vmem:[%s1877_s2] sm:$0xff]  ;;  %v208_v17 = vld [vmem:[%s1877_s2 + $0x8] sm:$0xff] }
   0xa   :  { %56 = vrot.lane.b32.xlu1 %v1460_v1, %s1412_s7  ;;  %54 = vrot.lane.b32.xlu0 %v1451_v0, %s1412_s7  ;;  %s1414_s9 = smov 80   ;;  %s1415_s10 = smov 96   ;;  %v1517_v18 = vld [vmem:[%s1876_s1 + $0x18] sm:$0xff]  ;;  %v1522_v19 = vld [vmem:[%s1876_s1 + $0x10] sm:$0xff]  ;;  %v1244_v23 = vpack.c.bf16 %v208_v17, %v207_v16  ;;  %vm114_vm1 = vcmask 130048   ;;  %vm119_vm2 = vcmask 261120  }
   0xb   :  { %s1416_s11 = smov 112   ;;  %v929_v20 = vld [vmem:[%s1877_s2 + $0x80] sm:$0xff]  ;;  %v930_v21 = vld [vmem:[%s1877_s2 + $0x88] sm:$0xff]  ;;  %v209_v26 = vld [vmem:[%s1877_s2 + $0x10] sm:$0xff]  ;;  %vm124_vm3 = vcmask 392192   ;;  %vm129_vm4 = vcmask 523264  }
   0xc   :  { %v210_v27 = vld [vmem:[%s1877_s2 + $0x18] sm:$0xff]  ;;  %v1271_v29 = vpack.c.bf16 %v930_v21, %v929_v20  ;;  %v931_v30 = vld [vmem:[%s1877_s2 + $0x90] sm:$0xff]  ;;  %v211_v33 = vld [vmem:[%s1877_s2 + $0x20] sm:$0xff]  ;;  %v926_v20 = vmul.f32 -1.442695, %v1517_v18  ;;  %vm134_vm5 = vcmask 654336  }
   0xd   :  { %v932_v31 = vld [vmem:[%s1877_s2 + $0x98] sm:$0xff]  ;;  %v1247_v32 = vpack.c.bf16 %v210_v27, %v209_v26  ;;  %v212_v34 = vld [vmem:[%s1877_s2 + $0x28] sm:$0xff]  ;;  %v933_v36 = vld [vmem:[%s1877_s2 + $0xa0] sm:$0xff]  ;;  %v925_v21 = vmul.f32 -1.442695, %v1522_v19  ;;  %vm139_vm6 = vcmask 785408  }
   0xe   :  { %68 = vrot.lane.b32.xlu1 %v1460_v1, %s1413_s8  ;;  %66 = vrot.lane.b32.xlu0 %v1451_v0, %s1413_s8  ;;  %v1360_v12 = vpop.eup %1359  ;;  %v1274_v35 = vpack.c.bf16 %v932_v31, %v931_v30  ;;  %v934_v37 = vld [vmem:[%s1877_s2 + $0xa8] sm:$0xff]  ;;  %v1250_v38 = vpack.c.bf16 %v212_v34, %v211_v33  ;;  %v213_v39 = vld [vmem:[%s1877_s2 + $0x30] sm:$0xff]  ;;  %vm144_vm7 = vcmask 916480   ;;  %s1417_s22 = smov [#allocation2]  }
   0xf   :  { %v1362_v13 = vpop.eup %1361  ;;  %v191_v14 = vadd.f32 1.0, %v1360_v12  ;;  %v214_v40 = vld [vmem:[%s1877_s2 + $0x38] sm:$0xff]  ;;  %v1277_v41 = vpack.c.bf16 %v934_v37, %v933_v36  ;;  %v935_v42 = vld [vmem:[%s1877_s2 + $0xb0] sm:$0xff]  ;;  %v215_v45 = vld [vmem:[%s1877_s2 + $0x40] sm:$0xff]  ;;  %s914_s23 = sshll.u32 %s1417_s22, 4  ;;  %s915_s23 = int_to_ptr.vmem [resolvable:$true] %s914_s23 }
  0x10   :  { %v192_v15 = vadd.f32 1.0, %v1362_v13  ;;  %v936_v43 = vld [vmem:[%s1877_s2 + $0xb8] sm:$0xff]  ;;  %v1253_v44 = vpack.c.bf16 %v214_v40, %v213_v39  ;;  %v216_v46 = vld [vmem:[%s1877_s2 + $0x48] sm:$0xff]  ;;  %v937_v48 = vld [vmem:[%s1877_s2 + $0xc0] sm:$0xff]  ;;  %p1388_p1 = scmp.lt.s32.totalorder %s915_s23, %s915_s23 }
  0x11   :  { %1363 = vrcp.f32 %v191_v14  ;;  %v1280_v47 = vpack.c.bf16 %v936_v43, %v935_v42  ;;  %v938_v49 = vld [vmem:[%s1877_s2 + $0xc8] sm:$0xff]  ;;  %v1256_v50 = vpack.c.bf16 %v216_v46, %v215_v45  ;;  %v217_v51 = vld [vmem:[%s1877_s2 + $0x50] sm:$0xff]  ;;  %v218_v52 = vld [vmem:[%s1877_s2 + $0x58] sm:$0xff] }
  0x12   :  { %80 = vrot.lane.b32.xlu1 %v1460_v1, %s1414_s9  ;;  %78 = vrot.lane.b32.xlu0 %v1451_v0, %s1414_s9  ;;  %1365 = vrcp.f32 %v192_v15  ;;  %v1283_v53 = vpack.c.bf16 %v938_v49, %v937_v48  ;;  %v939_v54 = vld [vmem:[%s1877_s2 + $0xd0] sm:$0xff]  ;;  %v940_v55 = vld [vmem:[%s1877_s2 + $0xd8] sm:$0xff]  ;;  %v1259_v56 = vpack.c.bf16 %v218_v52, %v217_v51 }
  0x13   :  { %v219_v57 = vld [vmem:[%s1877_s2 + $0x60] sm:$0xff]  ;;  %v220_v58 = vld [vmem:[%s1877_s2 + $0x68] sm:$0xff]  ;;  %v1286_v59 = vpack.c.bf16 %v940_v55, %v939_v54  ;;  %v221_v63 = vld [vmem:[%s1877_s2 + $0x70] sm:$0xff]  ;;  %1367 = vpow2.f32 %v926_v20 }
  0x14   :  { %v941_v60 = vld [vmem:[%s1877_s2 + $0xe0] sm:$0xff]  ;;  %v942_v61 = vld [vmem:[%s1877_s2 + $0xe8] sm:$0xff]  ;;  %v1262_v62 = vpack.c.bf16 %v220_v58, %v219_v57  ;;  %v222_v3 = vld [vmem:[%s1877_s2 + $0x78] sm:$0xff]  ;;  %1369 = vpow2.f32 %v925_v21 }
  0x15   :  { %v1289_v4 = vpack.c.bf16 %v942_v61, %v941_v60  ;;  %v943_v5 = vld [vmem:[%s1877_s2 + $0xf0] sm:$0xff]  ;;  %v944_v6 = vld [vmem:[%s1877_s2 + $0xf8] sm:$0xff]  ;;  %v1265_v7 = vpack.c.bf16 %v222_v3, %v221_v63  ;;  %v1683_v34 = vld [vmem:[%s1875_s0] ss:$0 sm:$0xff] }
  0x16   :  { %92 = vrot.lane.b32.xlu1 %v1460_v1, %s1415_s10  ;;  %90 = vrot.lane.b32.xlu0 %v1451_v0, %s1415_s10  ;;  %v1292_v8 = vpack.c.bf16 %v944_v6, %v943_v5  ;;  %v987_v3 = vld [vmem:[%s1878_s3 + $0x30] sm:$0xff]  ;;  %v966_v5 = vld [vmem:[%s1878_s3 + $0x20] sm:$0xff] }
  0x17   :  { %v967_v6 = vld [vmem:[%s1878_s3 + $0x28] sm:$0xff] }
  0x1a   :  { %104 = vrot.lane.b32.xlu1 %v1460_v1, %s1416_s11  ;;  %102 = vrot.lane.b32.xlu0 %v1451_v0, %s1416_s11 }
  0x1b   :  { %v1364_v22 = vpop.eup %1363 }
  0x1c   :  { %v1366_v24 = vpop.eup %1365  ;;  %v203_v25 = vmul.f32 %v1364_v22, %v1451_v0 }
  0x1d   :  { %v204_v28 = vmul.f32 %v1366_v24, %v1460_v1  ;;  %v1368_v43 = vpop.eup %1367 }
  0x1e   :  { %36 = vrot.lane.b32.xlu1 %v1517_v18, %s1408_s21  ;;  %34 = vrot.lane.b32.xlu0 %v1522_v19, %s1408_s21  ;;  %v194_v51 = vadd.f32 1.0, %v1368_v43 }
  0x1f   :  { %1077 = vmatmul.mubr.msk.f32.vlgmr.msra.gmra.mrb[0].mxu1 %vm114_vm1, %v203_v25  ;;  %1119 = vmatmul.mubr.msk.f32.vlgmr.msra.gmra.mrb[0].mxu0 %vm114_vm1, %v204_v28 }
  0x20   :  { %1245 = vmatpush3.bf16.msra.mxu1 %v1244_v23  ;;  %1272 = vmatpush3.bf16.msra.mxu0 %v1271_v29  ;;  %1371 = vrcp.f32 %v194_v51  ;;  %v955_v51 = vld [vmem:[%s1877_s2 + $0x128] sm:$0xff] }
  0x21   :  { %1246 = vmatprep.subr.bf16.mxu1 %v1409_v2  ;;  %1273 = vmatprep.subr.bf16.mxu0 %v1409_v2 }
  0x22   :  { %48 = vrot.lane.b32.xlu1 %v1517_v18, %s1407_s20  ;;  %46 = vrot.lane.b32.xlu0 %v1522_v19, %s1407_s20 }
  0x23   :  { %1111 = vmatprep.mubr.msk.f32.mxu1 %vm1410_vm0, %v1411_v10  ;;  %1153 = vmatprep.mubr.msk.f32.mxu0 %vm1410_vm0, %v1411_v10 }
  0x24   :  { %1248 = vmatpush3.bf16.msra.mxu1 %v1247_v32  ;;  %1275 = vmatpush3.bf16.msra.mxu0 %v1274_v35 }
  0x25   :  { %1249 = vmatprep.subr.bf16.mxu1 %v1409_v2  ;;  %1276 = vmatprep.subr.bf16.mxu0 %v1409_v2 }
  0x26   :  { %60 = vrot.lane.b32.xlu1 %v1517_v18, %s1412_s7  ;;  %58 = vrot.lane.b32.xlu0 %v1522_v19, %s1412_s7 }
  0x28   :  { %1251 = vmatpush3.bf16.msra.mxu1 %v1250_v38  ;;  %1278 = vmatpush3.bf16.msra.mxu0 %v1277_v41 }
  0x29   :  { %1252 = vmatprep.subr.bf16.mxu1 %v1409_v2  ;;  %1279 = vmatprep.subr.bf16.mxu0 %v1409_v2 }
  0x2a   :  { %72 = vrot.lane.b32.xlu1 %v1517_v18, %s1413_s8  ;;  %70 = vrot.lane.b32.xlu0 %v1522_v19, %s1413_s8 }
  0x2c   :  { %1254 = vmatpush3.bf16.msra.mxu1 %v1253_v44  ;;  %1281 = vmatpush3.bf16.msra.mxu0 %v1280_v47  ;;  %v1370_v44 = vpop.eup %1369 }
  0x2d   :  { %1255 = vmatprep.subr.bf16.mxu1 %v1409_v2  ;;  %1282 = vmatprep.subr.bf16.mxu0 %v1409_v2  ;;  %v193_v52 = vadd.f32 1.0, %v1370_v44 }
  0x2e   :  { %84 = vrot.lane.b32.xlu1 %v1517_v18, %s1414_s9  ;;  %82 = vrot.lane.b32.xlu0 %v1522_v19, %s1414_s9 }
  0x2f   :  { %1373 = vrcp.f32 %v193_v52 }
  0x30   :  { %1257 = vmatpush3.bf16.msra.mxu1 %v1256_v50  ;;  %1284 = vmatpush3.bf16.msra.mxu0 %v1283_v53 }
  0x31   :  { %1258 = vmatprep.subr.bf16.mxu1 %v1409_v2  ;;  %1285 = vmatprep.subr.bf16.mxu0 %v1409_v2 }
  0x32   :  { %96 = vrot.lane.b32.xlu1 %v1517_v18, %s1415_s10  ;;  %94 = vrot.lane.b32.xlu0 %v1522_v19, %s1415_s10 }
  0x34   :  { %1260 = vmatpush3.bf16.msra.mxu1 %v1259_v56  ;;  %1287 = vmatpush3.bf16.msra.mxu0 %v1286_v59 }
  0x35   :  { %1261 = vmatprep.subr.bf16.mxu1 %v1409_v2  ;;  %1288 = vmatprep.subr.bf16.mxu0 %v1409_v2 }
  0x36   :  { %108 = vrot.lane.b32.xlu1 %v1517_v18, %s1416_s11  ;;  %106 = vrot.lane.b32.xlu0 %v1522_v19, %s1416_s11 }
  0x38   :  { %1263 = vmatpush3.bf16.msra.mxu1 %v1262_v62  ;;  %1290 = vmatpush3.bf16.msra.mxu0 %v1289_v4  ;;  %v988_v4 = vld [vmem:[%s1878_s3 + $0x38] sm:$0xff] }
  0x39   :  { %1264 = vmatprep.subr.bf16.mxu1 %v1409_v2  ;;  %1291 = vmatprep.subr.bf16.mxu0 %v1409_v2 }
  0x3c   :  { %1266 = vmatpush3.bf16.msra.mxu1 %v1265_v7  ;;  %1293 = vmatpush3.bf16.msra.mxu0 %v1292_v8  ;;  %v1372_v8 = vpop.eup %1371 }
  0x3d   :  { %1294 = vmatprep.subr.bf16.mxu1 %v1409_v2  ;;  %1321 = vmatprep.subr.bf16.mxu0 %v1409_v2 }
  0x74   :  { %v43_v9 = vpop.permute.xlu1 %42  ;;  %v31_v11 = vpop.permute.xlu0 %30 }
  0x75   :  { %v115_v24 = vsel %vm114_vm1, %v1451_v0, %v31_v11 }
  0x76   :  { %v120_v27 = vsel %vm119_vm2, %v115_v24, %v43_v9 }
  0x78   :  { %v45_v12 = vpop.permute.xlu1 %44  ;;  %v33_v13 = vpop.permute.xlu0 %32 }
  0x79   :  { %v116_v25 = vsel %vm114_vm1, %v1460_v1, %v33_v13  ;;  %v1322_v13 = vpack.c.bf16 %v988_v4, %v987_v3  ;;  %v958_v3 = vld [vmem:[%s1877_s2 + $0x140] sm:$0xff]  ;;  %v959_v4 = vld [vmem:[%s1877_s2 + $0x148] sm:$0xff] }
  0x7a   :  { %v121_v26 = vsel %vm119_vm2, %v116_v25, %v45_v12 }
  0x7c   :  { %v57_v14 = vpop.permute.xlu1 %56  ;;  %v55_v15 = vpop.permute.xlu0 %54 }
  0x7d   :  { %v126_v30 = vsel %vm124_vm3, %v121_v26, %v57_v14  ;;  %v125_v31 = vsel %vm124_vm3, %v120_v27, %v55_v15  ;;  %v1374_v14 = vpop.eup %1373  ;;  %v1295_v15 = vpack.c.bf16 %v967_v6, %v966_v5  ;;  %v206_v26 = vmul.f32 %v1372_v8, %v1517_v18 }
  0x7e   :  { %v1310_v8 = vpack.c.bf16 %v959_v4, %v958_v3 }
  0x80   :  { %v69_v16 = vpop.permute.xlu1 %68  ;;  %v67_v17 = vpop.permute.xlu0 %66 }
  0x81   :  { %v131_v0 = vsel %vm129_vm4, %v126_v30, %v69_v16  ;;  %v130_v1 = vsel %vm129_vm4, %v125_v31, %v67_v17  ;;  %v971_v16 = vld [vmem:[%s1877_s2 + $0x180] sm:$0xff]  ;;  %v972_v17 = vld [vmem:[%s1877_s2 + $0x188] sm:$0xff] }
  0x82   :  { %v1325_v30 = vpack.c.bf16 %v972_v17, %v971_v16 }
  0x84   :  { %v81_v22 = vpop.permute.xlu1 %80  ;;  %v79_v23 = vpop.permute.xlu0 %78 }
  0x85   :  { %v136_v32 = vsel %vm134_vm5, %v131_v0, %v81_v22  ;;  %v135_v33 = vsel %vm134_vm5, %v130_v1, %v79_v23  ;;  %v950_v22 = vld [vmem:[%s1877_s2 + $0x100] sm:$0xff]  ;;  %v951_v23 = vld [vmem:[%s1877_s2 + $0x108] sm:$0xff]  ;;  %v973_v1 = vld [vmem:[%s1877_s2 + $0x190] sm:$0xff] }
  0x86   :  { %v1298_v0 = vpack.c.bf16 %v951_v23, %v950_v22  ;;  %v962_v22 = vld [vmem:[%s1877_s2 + $0x160] sm:$0xff]  ;;  %v963_v23 = vld [vmem:[%s1877_s2 + $0x168] sm:$0xff] }
  0x88   :  { %v93_v28 = vpop.permute.xlu1 %92  ;;  %v91_v29 = vpop.permute.xlu0 %90 }
  0x89   :  { %v141_v35 = vsel %vm139_vm6, %v136_v32, %v93_v28  ;;  %v140_v36 = vsel %vm139_vm6, %v135_v33, %v91_v29  ;;  %v205_v29 = vmul.f32 %v1374_v14, %v1522_v19  ;;  %v952_v33 = vld [vmem:[%s1877_s2 + $0x110] sm:$0xff] }
  0x8c   :  { %v105_v37 = vpop.permute.xlu1 %104  ;;  %v103_v38 = vpop.permute.xlu0 %102 }
  0x8d   :  { %v146_v39 = vsel %vm144_vm7, %v141_v35, %v105_v37  ;;  %v145_v40 = vsel %vm144_vm7, %v140_v36, %v103_v38  ;;  %v953_v35 = vld [vmem:[%s1877_s2 + $0x118] sm:$0xff] }
  0x8e   :  { %v156_v41 = vsub.f32 %v146_v39, %v1683_v34  ;;  %v155_v42 = vsub.f32 %v145_v40, %v1683_v34 }
  0x90   :  { %v160_v45 = vmul.f32 1.75, %v156_v41  ;;  %v159_v46 = vmul.f32 1.75, %v155_v42  ;;  %v37_v47 = vpop.permute.xlu1 %36  ;;  %v35_v48 = vpop.permute.xlu0 %34 }
  0x91   :  { %v118_v63 = vsel %vm114_vm1, %v1517_v18, %v37_v47  ;;  %v117_v7 = vsel %vm114_vm1, %v1522_v19, %v35_v48  ;;  %v974_v18 = vld [vmem:[%s1877_s2 + $0x198] sm:$0xff]  ;;  %v976_v47 = vld [vmem:[%s1877_s2 + $0x1a8] sm:$0xff] }
  0x92   :  { %v164_v49 = vmul.f32 %v160_v45, %v160_v45  ;;  %v163_v50 = vmul.f32 %v159_v46, %v159_v46  ;;  %v1328_v42 = vpack.c.bf16 %v974_v18, %v973_v1  ;;  %v1301_v45 = vpack.c.bf16 %v953_v35, %v952_v33  ;;  %v975_v46 = vld [vmem:[%s1877_s2 + $0x1a0] sm:$0xff] }
  0x94   :  { %v168_v53 = vsub.f32 0.0, %v164_v49  ;;  %v167_v54 = vsub.f32 0.0, %v163_v50  ;;  %v49_v55 = vpop.permute.xlu1 %48  ;;  %v47_v56 = vpop.permute.xlu0 %46  ;;  %v954_v50 = vld [vmem:[%s1877_s2 + $0x120] sm:$0xff] }
  0x95   :  { %v123_v9 = vsel %vm119_vm2, %v118_v63, %v49_v55  ;;  %v122_v21 = vsel %vm119_vm2, %v117_v7, %v47_v56  ;;  %v977_v55 = vld [vmem:[%s1877_s2 + $0x1b0] sm:$0xff]  ;;  %v978_v56 = vld [vmem:[%s1877_s2 + $0x1b8] sm:$0xff]  ;;  %v980_v63 = vld [vmem:[%s1877_s2 + $0x1c8] sm:$0xff] }
  0x96   :  { %v173_v57 = vmul.f32 1.442695, %v168_v53  ;;  %v171_v58 = vmul.f32 1.442695, %v167_v54  ;;  %v1331_v53 = vpack.c.bf16 %v976_v47, %v975_v46  ;;  %v1304_v54 = vpack.c.bf16 %v955_v51, %v954_v50  ;;  %v991_v47 = vld [vmem:[%s1879_s4 + $0x3] ss:$0 sm:$0xff] }
  0x98   :  { %1375 = vpow2.f32 %v173_v57  ;;  %v61_v59 = vpop.permute.xlu1 %60  ;;  %v59_v60 = vpop.permute.xlu0 %58  ;;  %v957_v57 = vld [vmem:[%s1877_s2 + $0x138] sm:$0xff] }
  0x99   :  { %1377 = vpow2.f32 %v171_v58  ;;  %v128_v25 = vsel %vm124_vm3, %v123_v9, %v61_v59  ;;  %v127_v31 = vsel %vm124_vm3, %v122_v21, %v59_v60  ;;  %v1334_v59 = vpack.c.bf16 %v978_v56, %v977_v55  ;;  %v981_v9 = vld [vmem:[%s1877_s2 + $0x1d0] sm:$0xff]  ;;  %v984_v21 = vld [vmem:[%s1877_s2 + $0x1e8] sm:$0xff]  ;;  %v928_v55 = vld [vmem:[%s1879_s4] ss:$0 sm:$0xff] }
  0x9c   :  { %v73_v61 = vpop.permute.xlu1 %72  ;;  %v71_v62 = vpop.permute.xlu0 %70 }
  0x9d   :  { %v133_v32 = vsel %vm129_vm4, %v128_v25, %v73_v61  ;;  %v132_v19 = vsel %vm129_vm4, %v127_v31, %v71_v62  ;;  %v979_v62 = vld [vmem:[%s1877_s2 + $0x1c0] sm:$0xff]  ;;  %v1316_v25 = vpack.c.bf16 %v963_v23, %v962_v22 }
  0x9e   :  { %v1337_v6 = vpack.c.bf16 %v980_v63, %v979_v62 }
  0xa0   :  { %v85_v11 = vpop.permute.xlu1 %84  ;;  %v83_v12 = vpop.permute.xlu0 %82 }
  0xa1   :  { %v138_v36 = vsel %vm134_vm5, %v133_v32, %v85_v11  ;;  %v137_v37 = vsel %vm134_vm5, %v132_v19, %v83_v12  ;;  %v982_v11 = vld [vmem:[%s1877_s2 + $0x1d8] sm:$0xff]  ;;  %v960_v12 = vld [vmem:[%s1877_s2 + $0x150] sm:$0xff] }
  0xa2   :  { %v1376_v20 = vpop.eup %1375 }
  0xa3   :  { %v1378_v24 = vpop.eup %1377  ;;  %1154 = vmatmul.mubr.f32.vlgmr.msra.gmra.mrb[2].mxu0 %v1376_v20  ;;  %v983_v20 = vld [vmem:[%s1877_s2 + $0x1e0] sm:$0xff] }
  0xa4   :  { %1112 = vmatmul.mubr.f32.vlgmr.msra.gmra.mrb[2].mxu1 %v1378_v24  ;;  %1323 = vmatpush3.bf16.msra.mxu0 %v1322_v13  ;;  %v97_v27 = vpop.permute.xlu1 %96  ;;  %v95_v28 = vpop.permute.xlu0 %94  ;;  %v961_v13 = vld [vmem:[%s1877_s2 + $0x158] sm:$0xff]  ;;  %v1343_v24 = vpack.c.bf16 %v984_v21, %v983_v20 }
  0xa5   :  { %1296 = vmatpush3.bf16.msra.mxu1 %v1295_v15  ;;  %1160 = vmatprep.mubr.msk.f32.mxu1 %vm1410_vm0, %v1411_v10  ;;  %v143_v38 = vsel %vm139_vm6, %v138_v36, %v97_v27  ;;  %v142_v39 = vsel %vm139_vm6, %v137_v37, %v95_v28  ;;  %v1340_v15 = vpack.c.bf16 %v982_v11, %v981_v9  ;;  %v986_v27 = vld [vmem:[%s1877_s2 + $0x1f8] sm:$0xff]  ;;  %v964_v28 = vld [vmem:[%s1877_s2 + $0x170] sm:$0xff]  ;;  %v949_v36 = vld [vmem:[%s1879_s4 + $0x1] ss:$0 sm:$0xff] }
  0xa6   :  { %1297 = vmatprep.subr.bf16.mxu1 %v1409_v2  ;;  %1202 = vmatprep.mubr.msk.f32.mxu0 %vm1410_vm0, %v1411_v10  ;;  %v1313_v17 = vpack.c.bf16 %v961_v13, %v960_v12 }
  0xa7   :  { %1324 = vmatprep.subr.bf16.mxu0 %v1409_v2  ;;  %1203 = vmatmul.mubr.msk.f32.vlgmr.msra.gmra.mrb[4].mxu0 %vm114_vm1, %v206_v26  ;;  %v985_v26 = vld [vmem:[%s1877_s2 + $0x1f0] sm:$0xff] }
  0xa8   :  { %1161 = vmatmul.mubr.msk.f32.vlgmr.msra.gmra.mrb[4].mxu1 %vm114_vm1, %v205_v29  ;;  %1326 = vmatpush3.bf16.msra.mxu0 %v1325_v30  ;;  %v109_v40 = vpop.permute.xlu1 %108  ;;  %v107_v41 = vpop.permute.xlu0 %106  ;;  %v965_v29 = vld [vmem:[%s1877_s2 + $0x178] sm:$0xff]  ;;  %v1346_v30 = vpack.c.bf16 %v986_v27, %v985_v26 }
  0xa9   :  { %1299 = vmatpush3.bf16.msra.mxu1 %v1298_v0  ;;  %v148_v43 = vsel %vm144_vm7, %v143_v38, %v109_v40  ;;  %v147_v44 = vsel %vm144_vm7, %v142_v39, %v107_v41  ;;  %1327 = vmatprep.subr.bf16.mxu0 %v1409_v2  ;;  %v1319_v31 = vpack.c.bf16 %v965_v29, %v964_v28 }
  0xaa   :  { %v158_v48 = vsub.f32 %v148_v43, %v1683_v34  ;;  %v157_v49 = vsub.f32 %v147_v44, %v1683_v34  ;;  %1300 = vmatprep.subr.bf16.mxu1 %v1409_v2  ;;  %1195 = vmatprep.mubr.msk.f32.mxu1 %vm1410_vm0, %v1411_v10 }
  0xab   :  { %1237 = vmatprep.mubr.msk.f32.mxu0 %vm1410_vm0, %v1411_v10  ;;  %v956_v10 = vld [vmem:[%s1877_s2 + $0x130] sm:$0xff] }
  0xac   :  { %v162_v52 = vmul.f32 1.75, %v158_v48  ;;  %1329 = vmatpush3.bf16.msra.mxu0 %v1328_v42  ;;  %v161_v34 = vmul.f32 1.75, %v157_v49  ;;  %v1307_v61 = vpack.c.bf16 %v957_v57, %v956_v10  ;;  %v970_v49 = vld [vmem:[%s1879_s4 + $0x2] ss:$0 sm:$0xff] }
  0xad   :  { %1302 = vmatpush3.bf16.msra.mxu1 %v1301_v45  ;;  %1330 = vmatprep.subr.bf16.mxu0 %v1409_v2 }
  0xae   :  { %1303 = vmatprep.subr.bf16.mxu1 %v1409_v2  ;;  %v166_v58 = vmul.f32 %v162_v52, %v162_v52  ;;  %v165_v60 = vmul.f32 %v161_v34, %v161_v34 }
  0xb0   :  { %1332 = vmatpush3.bf16.msra.mxu0 %v1331_v53  ;;  %v170_v5 = vsub.f32 0.0, %v166_v58  ;;  %v169_v7 = vsub.f32 0.0, %v165_v60 }
  0xb1   :  { %1305 = vmatpush3.bf16.msra.mxu1 %v1304_v54  ;;  %1333 = vmatprep.subr.bf16.mxu0 %v1409_v2 }
  0xb2   :  { %1306 = vmatprep.subr.bf16.mxu1 %v1409_v2  ;;  %v177_v14 = vmul.f32 1.442695, %v170_v5  ;;  %v175_v16 = vmul.f32 1.442695, %v169_v7 }
  0xb4   :  { %1335 = vmatpush3.bf16.msra.mxu0 %v1334_v59  ;;  %1379 = vpow2.f32 %v177_v14 }
  0xb5   :  { %1308 = vmatpush3.bf16.msra.mxu1 %v1307_v61  ;;  %1336 = vmatprep.subr.bf16.mxu0 %v1409_v2  ;;  %1381 = vpow2.f32 %v175_v16 }
  0xb6   :  { %1309 = vmatprep.subr.bf16.mxu1 %v1409_v2 }
  0xb8   :  { %1338 = vmatpush3.bf16.msra.mxu0 %v1337_v6 }
  0xb9   :  { %1311 = vmatpush3.bf16.msra.mxu1 %v1310_v8  ;;  %1339 = vmatprep.subr.bf16.mxu0 %v1409_v2 }
  0xba   :  { %1312 = vmatprep.subr.bf16.mxu1 %v1409_v2 }
  0xbc   :  { %1341 = vmatpush3.bf16.msra.mxu0 %v1340_v15 }
  0xbd   :  { %1314 = vmatpush3.bf16.msra.mxu1 %v1313_v17  ;;  %1342 = vmatprep.subr.bf16.mxu0 %v1409_v2 }
  0xbe   :  { %1315 = vmatprep.subr.bf16.mxu1 %v1409_v2  ;;  %v1380_v0 = vpop.eup %1379 }
  0xbf   :  { %v1382_v1 = vpop.eup %1381 }
  0xc0   :  { %1344 = vmatpush3.bf16.msra.mxu0 %v1343_v24 }
  0xc1   :  { %1317 = vmatpush3.bf16.msra.mxu1 %v1316_v25  ;;  %1345 = vmatprep.subr.bf16.mxu0 %v1409_v2 }
  0xc2   :  { %1318 = vmatprep.subr.bf16.mxu1 %v1409_v2 }
  0xc4   :  { %1347 = vmatpush3.bf16.msra.mxu0 %v1346_v30 }
  0xc5   :  { %1320 = vmatpush3.bf16.msra.mxu1 %v1319_v31 }
  0xc7   :  { %1238 = vmatmul.mubr.f32.vlgmr.msra.gmra.mrb[6].mxu0 %v1380_v0 }
  0xc8   :  { %1196 = vmatmul.mubr.f32.vlgmr.msra.gmra.mrb[6].mxu1 %v1382_v1 }
  0xf2   :  { %v294_v18 = vpop.f32.mrb[0].mxu1  ;;  %v465_v19 = vpop.f32.mrb[0].mxu0 }
  0xf3   :  { %v1078_v32 = vpop.f32.mrb[1].mxu1  ;;  %v1120_v33 = vpop.f32.mrb[1].mxu0 }
 0x176   :  { %v535_v35 = vpop.f32.mrb[2].mxu0 }
 0x177   :  { %v364_v37 = vpop.f32.mrb[2].mxu1  ;;  %v536_v38 = vadd.f32 %v535_v35, %v465_v19  ;;  %v1155_v39 = vpop.f32.mrb[3].mxu0 }
 0x178   :  { %v365_v40 = vadd.f32 %v364_v37, %v294_v18  ;;  %v1113_v2 = vpop.f32.mrb[3].mxu1 }
 0x179   :  { %v547_v41 = vadd.f32 %v949_v36, %v536_v38 }
 0x17a   :  { %v809_v42 = vpop.f32.mrb[4].mxu0  ;;  %v375_v10 = vadd.f32 %v928_v55, %v365_v40 }
 0x17b   :  { %v637_v43 = vpop.f32.mrb[4].mxu1  ;;  %893 = vrot.lane.b32.xlu0 %v547_v41, %s1407_s20  ;;  %v1204_v44 = vpop.f32.mrb[5].mxu0 }
 0x17c   :  { %v1162_v45 = vpop.f32.mrb[5].mxu1 }
 0x19a   :  { %v879_v46 = vpop.f32.mrb[6].mxu0 }
 0x19b   :  { %v707_v48 = vpop.f32.mrb[6].mxu1  ;;  %v880_v50 = vadd.f32 %v879_v46, %v809_v42  ;;  %v1239_v51 = vpop.f32.mrb[7].mxu0 }
 0x19c   :  { %v708_v52 = vadd.f32 %v707_v48, %v637_v43  ;;  %v1197_v53 = vpop.f32.mrb[7].mxu1 }
 0x19d   :  { %v891_v34 = vadd.f32 %v991_v47, %v880_v50 }
 0x19e   :  { %v719_v54 = vadd.f32 %v970_v49, %v708_v52 }
 0x19f   :  { %901 = vrot.lane.b32.xlu0 %v891_v34, %s1415_s10  ;;  %s1383_s10 = scalar_lea.vmem %s915_s23, 128 }
 0x1a0   :  { %897 = vrot.lane.b32.xlu1 %v719_v54, %s1413_s8  ;;  %p1384_p0 = scmp.ne.s32.totalorder %s915_s23, %s1383_s10  ;;  %p1389_p2 = scmp.lt.s32.totalorder %s1383_s10, %s1383_s10 }
 0x1a2   :  { %p1390_p3 = por %p1389_p2, %p1388_p1 }
 0x1a4   :  { %p1391_p4 = pnand %p1390_p3, %p1384_p0 }
 0x1ed   :  { %v894_v56 = vpop.permute.xlu0 %893 }
 0x1ee   :  { %v904_v58 = vsel %vm119_vm2, %v375_v10, %v894_v56 }
 0x211   :  { %v902_v57 = vpop.permute.xlu0 %901 }
 0x212   :  { %v898_v59 = vpop.permute.xlu1 %897 }
 0x213   :  { %v905_v60 = vsel %vm129_vm4, %v904_v58, %v898_v59 }
 0x214   :  { %v906_v61 = vsel %vm139_vm6, %v905_v60, %v902_v57 }
 0x215   :  { %907 = vst [vmem:[#allocation2] sm:$0xff] %v906_v61 }
 0x216   :  { %1394 = shalt.err (!%p1391_p4)
}
 0x217   :  { %s1395_s9 = scalar_lea.hbm %s1880_s5, 128 }
 0x218   :  { %p1396_p5 = scmp.ne.s32.totalorder %s1880_s5, %s1395_s9  ;;  %p1399_p6 = scmp.lt.u32.totalorder %s1395_s9, %s1880_s5 }
 0x21a   :  { %p1401_p7 = pnand %p1399_p6, %p1396_p5 }
 0x21c   :  { %1404 = shalt.err (!%p1401_p7)
}
 0x21d   :  { %917 = dma.vmem_to_hbm [thread:$0]  %s915_s23, 128, %s1880_s5, [#allocation3]  }
 0x21e   :  { %1405 = dma.done.wait [#allocation3], 128  }
 0x21f   :  { %1406 = vsyncadd [#allocation3], 4294967168 }
 0x220   :  { %921 = vsyncpa [#allocation3], 1 }

</bundles_post_ra>
